<compile_context>
chip_gen: v6e
topology: v6e:2x2x1
jax: 0.10.0
libtpu: 0.0.40
codegen_flags: <defaults>
</compile_context>

<pallas_src>
import math

import jax
import jax.numpy as jnp
from jax.experimental import pallas as pl
from jax.experimental.pallas import tpu as pltpu


def _gated_conv1d_kernel(x_ref, w_ref, b_ref, o_ref):
    """Gated 1-D conv for a tile of TB batch rows.

    x_ref : (TB, Cin, L)        input activations (L on lanes)
    w_ref : (K, Cout+1, Cin)    combined conv weight; row Cout = folded gate row
    b_ref : (Cout+1, 1)         combined bias (row Cout = folded gate bias)
    o_ref : (TB, Cout, Lout)    output, PyTorch layout, lane-dense on Lout
    """
    TB = x_ref.shape[0]
    K = w_ref.shape[0]
    Cout = o_ref.shape[1]
    Lout = o_ref.shape[2]

    bias = b_ref[...].astype(jnp.float32)                      # (Cout+1, 1)
    # Load each tap's weight once (constant across the TB unrolled rows).
    w_taps = [w_ref[k].astype(jnp.float32) for k in range(K)]  # (Cout+1, Cin)

    for bi in range(TB):                       # TB is small & static -> unrolled
        x = x_ref[bi].astype(jnp.float32)      # (Cin, L)
        acc = bias                             # broadcasts to (Cout+1, Lout)
        for k in range(K):                     # K static -> unrolled MXU matmuls
            acc = acc + jnp.dot(w_taps[k], x[:, k:k + Lout],
                                preferred_element_type=jnp.float32)
        # Row Cout is the (already Linear-folded) gate logit.
        gate = 1.0 / (1.0 + jnp.exp(-acc[Cout:, :]))           # (1, Lout), EUP
        o_ref[bi] = (acc[:Cout, :] * gate).astype(o_ref.dtype)  # (Cout, Lout)


def gated_conv1d_forward(x, conv_w, conv_b, lin_w, lin_b, *, block_b=4):
    """Exact JAX/Pallas equivalent of GatedConv1d.forward (stride=1, no pad)."""
    B, Cin, L = x.shape
    C2, _, K = conv_w.shape
    assert C2 % 2 == 0, "out_channels must be even"
    Cout = C2 // 2
    Lout = L - K + 1

    # --- hoisted, data-independent weight prep (runs once, outside the grid) --
    # Fold Linear(Cout -> 1) into the gate half of the conv weights:
    #   gate_logit = sum_c lin_w[c] * Q[c] + lin_b
    #             = conv(x; sum_c lin_w[c] * W[Cout+c]) + (lin_w . conv_b[Cout:] + lin_b)
    hi = jax.lax.Precision.HIGHEST
    w_p = conv_w[:Cout]                                             # (Cout, Cin, K)
    w_g = jnp.einsum("c,cik->ik", lin_w[0], conv_w[Cout:],
                     precision=hi)[None]                            # (1, Cin, K)
    w_comb = jnp.transpose(jnp.concatenate([w_p, w_g], axis=0),
                           (2, 0, 1))                               # (K, Cout+1, Cin)
    b_g = jnp.dot(lin_w[0], conv_b[Cout:], precision=hi) + lin_b[0]
    b_comb = jnp.concatenate([conv_b[:Cout],
                              b_g.reshape(1)]).reshape(Cout + 1, 1)  # (Cout+1, 1)

    # --- batch tiling: largest divisor of B that is <= block_b ---------------
    tb = 1
    for cand in range(min(block_b, B), 0, -1):
        if B % cand == 0:
            tb = cand
            break
    grid = (B // tb,)

    return pl.pallas_call(
        _gated_conv1d_kernel,
        out_shape=jax.ShapeDtypeStruct((B, Cout, Lout), x.dtype),
        grid_spec=pltpu.PrefetchScalarGridSpec(
            num_scalar_prefetch=0,
            grid=grid,
            in_specs=[
                pl.BlockSpec((tb, Cin, L), lambda i: (i, 0, 0)),
                # Weights / bias: constant index maps -> fetched once.
                pl.BlockSpec((K, Cout + 1, Cin), lambda i: (0, 0, 0)),
                pl.BlockSpec((Cout + 1, 1), lambda i: (0, 0)),
            ],
            out_specs=pl.BlockSpec((tb, Cout, Lout), lambda i: (i, 0, 0)),
        ),
        compiler_params=pltpu.CompilerParams(
            dimension_semantics=("parallel",)),  # batch tiles -> both v7x TCs
    )(x, w_comb, b_comb)


def gated_conv1d_reference(x, conv_w, conv_b, lin_w, lin_b):
    """Pure-JAX transliteration of the PyTorch forward (for validation)."""
    C2 = conv_w.shape[0]
    Cout = C2 // 2
    hi = jax.lax.Precision.HIGHEST
    conv_out = jax.lax.conv_general_dilated(
        x, conv_w, window_strides=(1,), padding="VALID",
        dimension_numbers=("NCH", "OIH", "NCH"), precision=hi)
    conv_out = conv_out + conv_b[None, :, None]
    P = conv_out[:, :Cout, :]
    Q = conv_out[:, Cout:, :]
    q = jnp.einsum("bcl,oc->bol", Q, lin_w, precision=hi) + lin_b[None, :, None]
    return P * jax.nn.sigmoid(q)


if __name__ == "__main__":
    # Module hyper-params: in_channels=16, out_channels=32 (even -> Cout=16),
    # kernel_size=3, stride=1, no padding.  L=130 -> Lout=128 (lane-dense).
    B, Cin, L = 8, 16, 130
    out_channels, K = 32, 3
    Cout = out_channels // 2
    Lout = L - K + 1

    key = jax.random.PRNGKey(0)
    kx, kw, kb, klw, klb = jax.random.split(key, 5)
    x = jax.random.normal(kx, (B, Cin, L), jnp.float32)
    conv_w = jax.random.normal(kw, (out_channels, Cin, K),
                               jnp.float32) / math.sqrt(Cin * K)
    conv_b = 0.1 * jax.random.normal(kb, (out_channels,), jnp.float32)
    lin_w = jax.random.normal(klw, (1, Cout), jnp.float32) / math.sqrt(Cout)
    lin_b = 0.1 * jax.random.normal(klb, (1,), jnp.float32)

    out = jax.block_until_ready(
        jax.jit(gated_conv1d_forward)(x, conv_w, conv_b, lin_w, lin_b))
    ref = jax.block_until_ready(
        gated_conv1d_reference(x, conv_w, conv_b, lin_w, lin_b))

    assert out.shape == (B, Cout, Lout), out.shape
    assert out.dtype == jnp.float32
    assert jnp.allclose(out, ref, rtol=1e-4, atol=1e-4), \
        f"max abs err {jnp.max(jnp.abs(out - ref))}"

    print("KERNEL_OK")
</pallas_src>

<mosaic_0001>
module attributes {stable_mosaic.version = 11 : i64} {
  func.func @_gated_conv1d_kernel(%arg0: i32, %arg1: memref<4x16x130xf32, #tpu.memory_space<vmem>>, %arg2: memref<3x17x16xf32, #tpu.memory_space<vmem>>, %arg3: memref<17x1xf32, #tpu.memory_space<vmem>>, %arg4: memref<4x16x128xf32, #tpu.memory_space<vmem>>) attributes {dimension_semantics = [#tpu.dimension_semantics<parallel>], iteration_bounds = array<i64: 2>, scalar_prefetch = 0 : i64, scratch_operands = 0 : i64, tpu.core_type = #tpu.core_type<tc>, window_params = [{transform_indices = @transform_0, window_bounds = array<i64: 4, 16, 130>}, {pipeline_mode = #tpu.pipeline_mode<synchronous>, transform_indices = @transform_1, window_bounds = array<i64: 3, 17, 16>}, {pipeline_mode = #tpu.pipeline_mode<synchronous>, transform_indices = @transform_2, window_bounds = array<i64: 17, 1>}, {transform_indices = @transform_3, window_bounds = array<i64: 4, 16, 128>}]} {
    %c0 = arith.constant 0 : index
    %c0_0 = arith.constant 0 : index
    %0 = vector.load %arg3[%c0, %c0_0] : memref<17x1xf32, #tpu.memory_space<vmem>>, vector<17x1xf32>
    %c0_1 = arith.constant 0 : index
    %c0_2 = arith.constant 0 : index
    %c0_3 = arith.constant 0 : index
    %1 = vector.load %arg2[%c0_1, %c0_2, %c0_3] : memref<3x17x16xf32, #tpu.memory_space<vmem>>, vector<1x17x16xf32>
    %2 = vector.shape_cast %1 : vector<1x17x16xf32> to vector<17x16xf32>
    %c1 = arith.constant 1 : index
    %c0_4 = arith.constant 0 : index
    %c0_5 = arith.constant 0 : index
    %3 = vector.load %arg2[%c1, %c0_4, %c0_5] : memref<3x17x16xf32, #tpu.memory_space<vmem>>, vector<1x17x16xf32>
    %4 = vector.shape_cast %3 : vector<1x17x16xf32> to vector<17x16xf32>
    %c2 = arith.constant 2 : index
    %c0_6 = arith.constant 0 : index
    %c0_7 = arith.constant 0 : index
    %5 = vector.load %arg2[%c2, %c0_6, %c0_7] : memref<3x17x16xf32, #tpu.memory_space<vmem>>, vector<1x17x16xf32>
    %6 = vector.shape_cast %5 : vector<1x17x16xf32> to vector<17x16xf32>
    %c0_8 = arith.constant 0 : index
    %c0_9 = arith.constant 0 : index
    %c0_10 = arith.constant 0 : index
    %7 = vector.load %arg1[%c0_8, %c0_9, %c0_10] : memref<4x16x130xf32, #tpu.memory_space<vmem>>, vector<1x16x130xf32>
    %8 = vector.shape_cast %7 : vector<1x16x130xf32> to vector<16x130xf32>
    %9 = vector.extract_strided_slice %8 {offsets = [0, 0], sizes = [16, 128], strides = [1, 1]} : vector<16x130xf32> to vector<16x128xf32>
    %cst = arith.constant dense<0.000000e+00> : vector<17x128xf32>
    %10 = tpu.matmul %2, %9, %cst {dimension_numbers = #tpu.dot_dimension_numbers<[1], [0], [0], [1], [0, 0, 1, 1], [], []>} : vector<17x16xf32>, vector<16x128xf32>, vector<17x128xf32> -> vector<17x128xf32>
    %11 = vector.broadcast %0 : vector<17x1xf32> to vector<17x128xf32>
    %12 = arith.addf %11, %10 : vector<17x128xf32>
    %13 = vector.extract_strided_slice %8 {offsets = [0, 1], sizes = [16, 128], strides = [1, 1]} : vector<16x130xf32> to vector<16x128xf32>
    %cst_11 = arith.constant dense<0.000000e+00> : vector<17x128xf32>
    %14 = tpu.matmul %4, %13, %cst_11 {dimension_numbers = #tpu.dot_dimension_numbers<[1], [0], [0], [1], [0, 0, 1, 1], [], []>} : vector<17x16xf32>, vector<16x128xf32>, vector<17x128xf32> -> vector<17x128xf32>
    %15 = arith.addf %12, %14 : vector<17x128xf32>
    %16 = vector.extract_strided_slice %8 {offsets = [0, 2], sizes = [16, 128], strides = [1, 1]} : vector<16x130xf32> to vector<16x128xf32>
    %cst_12 = arith.constant dense<0.000000e+00> : vector<17x128xf32>
    %17 = tpu.matmul %6, %16, %cst_12 {dimension_numbers = #tpu.dot_dimension_numbers<[1], [0], [0], [1], [0, 0, 1, 1], [], []>} : vector<17x16xf32>, vector<16x128xf32>, vector<17x128xf32> -> vector<17x128xf32>
    %18 = arith.addf %15, %17 : vector<17x128xf32>
    %19 = vector.extract_strided_slice %18 {offsets = [16, 0], sizes = [1, 128], strides = [1, 1]} : vector<17x128xf32> to vector<1x128xf32>
    %cst_13 = arith.constant 0.000000e+00 : f32
    %20 = vector.broadcast %cst_13 : f32 to vector<1x128xf32>
    %21 = arith.subf %20, %19 : vector<1x128xf32>
    %22 = math.exp %21 : vector<1x128xf32>
    %cst_14 = arith.constant 1.000000e+00 : f32
    %23 = vector.broadcast %cst_14 : f32 to vector<1x128xf32>
    %24 = arith.addf %23, %22 : vector<1x128xf32>
    %cst_15 = arith.constant 1.000000e+00 : f32
    %25 = vector.broadcast %cst_15 : f32 to vector<1x128xf32>
    %26 = arith.divf %25, %24 : vector<1x128xf32>
    %27 = vector.extract_strided_slice %18 {offsets = [0, 0], sizes = [16, 128], strides = [1, 1]} : vector<17x128xf32> to vector<16x128xf32>
    %28 = vector.broadcast %26 : vector<1x128xf32> to vector<16x128xf32>
    %29 = arith.mulf %27, %28 : vector<16x128xf32>
    %c0_16 = arith.constant 0 : index
    %c0_17 = arith.constant 0 : index
    %c0_18 = arith.constant 0 : index
    %30 = vector.load %arg4[%c0_16, %c0_17, %c0_18] : memref<4x16x128xf32, #tpu.memory_space<vmem>>, vector<1x16x128xf32>
    %31 = vector.shape_cast %30 : vector<1x16x128xf32> to vector<16x128xf32>
    %32 = vector.shape_cast %29 : vector<16x128xf32> to vector<1x16x128xf32>
    tpu.vector_store %arg4[%c0_16, %c0_17, %c0_18], %32 {strides = array<i32>} : memref<4x16x128xf32, #tpu.memory_space<vmem>>, vector<1x16x128xf32>,
    %c1_19 = arith.constant 1 : index
    %c0_20 = arith.constant 0 : index
    %c0_21 = arith.constant 0 : index
    %33 = vector.load %arg1[%c1_19, %c0_20, %c0_21] : memref<4x16x130xf32, #tpu.memory_space<vmem>>, vector<1x16x130xf32>
    %34 = vector.shape_cast %33 : vector<1x16x130xf32> to vector<16x130xf32>
    %35 = vector.extract_strided_slice %34 {offsets = [0, 0], sizes = [16, 128], strides = [1, 1]} : vector<16x130xf32> to vector<16x128xf32>
    %cst_22 = arith.constant dense<0.000000e+00> : vector<17x128xf32>
    %36 = tpu.matmul %2, %35, %cst_22 {dimension_numbers = #tpu.dot_dimension_numbers<[1], [0], [0], [1], [0, 0, 1, 1], [], []>} : vector<17x16xf32>, vector<16x128xf32>, vector<17x128xf32> -> vector<17x128xf32>
    %37 = vector.broadcast %0 : vector<17x1xf32> to vector<17x128xf32>
    %38 = arith.addf %37, %36 : vector<17x128xf32>
    %39 = vector.extract_strided_slice %34 {offsets = [0, 1], sizes = [16, 128], strides = [1, 1]} : vector<16x130xf32> to vector<16x128xf32>
    %cst_23 = arith.constant dense<0.000000e+00> : vector<17x128xf32>
    %40 = tpu.matmul %4, %39, %cst_23 {dimension_numbers = #tpu.dot_dimension_numbers<[1], [0], [0], [1], [0, 0, 1, 1], [], []>} : vector<17x16xf32>, vector<16x128xf32>, vector<17x128xf32> -> vector<17x128xf32>
    %41 = arith.addf %38, %40 : vector<17x128xf32>
    %42 = vector.extract_strided_slice %34 {offsets = [0, 2], sizes = [16, 128], strides = [1, 1]} : vector<16x130xf32> to vector<16x128xf32>
    %cst_24 = arith.constant dense<0.000000e+00> : vector<17x128xf32>
    %43 = tpu.matmul %6, %42, %cst_24 {dimension_numbers = #tpu.dot_dimension_numbers<[1], [0], [0], [1], [0, 0, 1, 1], [], []>} : vector<17x16xf32>, vector<16x128xf32>, vector<17x128xf32> -> vector<17x128xf32>
    %44 = arith.addf %41, %43 : vector<17x128xf32>
    %45 = vector.extract_strided_slice %44 {offsets = [16, 0], sizes = [1, 128], strides = [1, 1]} : vector<17x128xf32> to vector<1x128xf32>
    %cst_25 = arith.constant 0.000000e+00 : f32
    %46 = vector.broadcast %cst_25 : f32 to vector<1x128xf32>
    %47 = arith.subf %46, %45 : vector<1x128xf32>
    %48 = math.exp %47 : vector<1x128xf32>
    %cst_26 = arith.constant 1.000000e+00 : f32
    %49 = vector.broadcast %cst_26 : f32 to vector<1x128xf32>
    %50 = arith.addf %49, %48 : vector<1x128xf32>
    %cst_27 = arith.constant 1.000000e+00 : f32
    %51 = vector.broadcast %cst_27 : f32 to vector<1x128xf32>
    %52 = arith.divf %51, %50 : vector<1x128xf32>
    %53 = vector.extract_strided_slice %44 {offsets = [0, 0], sizes = [16, 128], strides = [1, 1]} : vector<17x128xf32> to vector<16x128xf32>
    %54 = vector.broadcast %52 : vector<1x128xf32> to vector<16x128xf32>
    %55 = arith.mulf %53, %54 : vector<16x128xf32>
    %c1_28 = arith.constant 1 : index
    %c0_29 = arith.constant 0 : index
    %c0_30 = arith.constant 0 : index
    %56 = vector.load %arg4[%c1_28, %c0_29, %c0_30] : memref<4x16x128xf32, #tpu.memory_space<vmem>>, vector<1x16x128xf32>
    %57 = vector.shape_cast %56 : vector<1x16x128xf32> to vector<16x128xf32>
    %58 = vector.shape_cast %55 : vector<16x128xf32> to vector<1x16x128xf32>
    tpu.vector_store %arg4[%c1_28, %c0_29, %c0_30], %58 {strides = array<i32>} : memref<4x16x128xf32, #tpu.memory_space<vmem>>, vector<1x16x128xf32>,
    %c2_31 = arith.constant 2 : index
    %c0_32 = arith.constant 0 : index
    %c0_33 = arith.constant 0 : index
    %59 = vector.load %arg1[%c2_31, %c0_32, %c0_33] : memref<4x16x130xf32, #tpu.memory_space<vmem>>, vector<1x16x130xf32>
    %60 = vector.shape_cast %59 : vector<1x16x130xf32> to vector<16x130xf32>
    %61 = vector.extract_strided_slice %60 {offsets = [0, 0], sizes = [16, 128], strides = [1, 1]} : vector<16x130xf32> to vector<16x128xf32>
    %cst_34 = arith.constant dense<0.000000e+00> : vector<17x128xf32>
    %62 = tpu.matmul %2, %61, %cst_34 {dimension_numbers = #tpu.dot_dimension_numbers<[1], [0], [0], [1], [0, 0, 1, 1], [], []>} : vector<17x16xf32>, vector<16x128xf32>, vector<17x128xf32> -> vector<17x128xf32>
    %63 = vector.broadcast %0 : vector<17x1xf32> to vector<17x128xf32>
    %64 = arith.addf %63, %62 : vector<17x128xf32>
    %65 = vector.extract_strided_slice %60 {offsets = [0, 1], sizes = [16, 128], strides = [1, 1]} : vector<16x130xf32> to vector<16x128xf32>
    %cst_35 = arith.constant dense<0.000000e+00> : vector<17x128xf32>
    %66 = tpu.matmul %4, %65, %cst_35 {dimension_numbers = #tpu.dot_dimension_numbers<[1], [0], [0], [1], [0, 0, 1, 1], [], []>} : vector<17x16xf32>, vector<16x128xf32>, vector<17x128xf32> -> vector<17x128xf32>
    %67 = arith.addf %64, %66 : vector<17x128xf32>
    %68 = vector.extract_strided_slice %60 {offsets = [0, 2], sizes = [16, 128], strides = [1, 1]} : vector<16x130xf32> to vector<16x128xf32>
    %cst_36 = arith.constant dense<0.000000e+00> : vector<17x128xf32>
    %69 = tpu.matmul %6, %68, %cst_36 {dimension_numbers = #tpu.dot_dimension_numbers<[1], [0], [0], [1], [0, 0, 1, 1], [], []>} : vector<17x16xf32>, vector<16x128xf32>, vector<17x128xf32> -> vector<17x128xf32>
    %70 = arith.addf %67, %69 : vector<17x128xf32>
    %71 = vector.extract_strided_slice %70 {offsets = [16, 0], sizes = [1, 128], strides = [1, 1]} : vector<17x128xf32> to vector<1x128xf32>
    %cst_37 = arith.constant 0.000000e+00 : f32
    %72 = vector.broadcast %cst_37 : f32 to vector<1x128xf32>
    %73 = arith.subf %72, %71 : vector<1x128xf32>
    %74 = math.exp %73 : vector<1x128xf32>
    %cst_38 = arith.constant 1.000000e+00 : f32
    %75 = vector.broadcast %cst_38 : f32 to vector<1x128xf32>
    %76 = arith.addf %75, %74 : vector<1x128xf32>
    %cst_39 = arith.constant 1.000000e+00 : f32
    %77 = vector.broadcast %cst_39 : f32 to vector<1x128xf32>
    %78 = arith.divf %77, %76 : vector<1x128xf32>
    %79 = vector.extract_strided_slice %70 {offsets = [0, 0], sizes = [16, 128], strides = [1, 1]} : vector<17x128xf32> to vector<16x128xf32>
    %80 = vector.broadcast %78 : vector<1x128xf32> to vector<16x128xf32>
    %81 = arith.mulf %79, %80 : vector<16x128xf32>
    %c2_40 = arith.constant 2 : index
    %c0_41 = arith.constant 0 : index
    %c0_42 = arith.constant 0 : index
    %82 = vector.load %arg4[%c2_40, %c0_41, %c0_42] : memref<4x16x128xf32, #tpu.memory_space<vmem>>, vector<1x16x128xf32>
    %83 = vector.shape_cast %82 : vector<1x16x128xf32> to vector<16x128xf32>
    %84 = vector.shape_cast %81 : vector<16x128xf32> to vector<1x16x128xf32>
    tpu.vector_store %arg4[%c2_40, %c0_41, %c0_42], %84 {strides = array<i32>} : memref<4x16x128xf32, #tpu.memory_space<vmem>>, vector<1x16x128xf32>,
    %c3 = arith.constant 3 : index
    %c0_43 = arith.constant 0 : index
    %c0_44 = arith.constant 0 : index
    %85 = vector.load %arg1[%c3, %c0_43, %c0_44] : memref<4x16x130xf32, #tpu.memory_space<vmem>>, vector<1x16x130xf32>
    %86 = vector.shape_cast %85 : vector<1x16x130xf32> to vector<16x130xf32>
    %87 = vector.extract_strided_slice %86 {offsets = [0, 0], sizes = [16, 128], strides = [1, 1]} : vector<16x130xf32> to vector<16x128xf32>
    %cst_45 = arith.constant dense<0.000000e+00> : vector<17x128xf32>
    %88 = tpu.matmul %2, %87, %cst_45 {dimension_numbers = #tpu.dot_dimension_numbers<[1], [0], [0], [1], [0, 0, 1, 1], [], []>} : vector<17x16xf32>, vector<16x128xf32>, vector<17x128xf32> -> vector<17x128xf32>
    %89 = vector.broadcast %0 : vector<17x1xf32> to vector<17x128xf32>
    %90 = arith.addf %89, %88 : vector<17x128xf32>
    %91 = vector.extract_strided_slice %86 {offsets = [0, 1], sizes = [16, 128], strides = [1, 1]} : vector<16x130xf32> to vector<16x128xf32>
    %cst_46 = arith.constant dense<0.000000e+00> : vector<17x128xf32>
    %92 = tpu.matmul %4, %91, %cst_46 {dimension_numbers = #tpu.dot_dimension_numbers<[1], [0], [0], [1], [0, 0, 1, 1], [], []>} : vector<17x16xf32>, vector<16x128xf32>, vector<17x128xf32> -> vector<17x128xf32>
    %93 = arith.addf %90, %92 : vector<17x128xf32>
    %94 = vector.extract_strided_slice %86 {offsets = [0, 2], sizes = [16, 128], strides = [1, 1]} : vector<16x130xf32> to vector<16x128xf32>
    %cst_47 = arith.constant dense<0.000000e+00> : vector<17x128xf32>
    %95 = tpu.matmul %6, %94, %cst_47 {dimension_numbers = #tpu.dot_dimension_numbers<[1], [0], [0], [1], [0, 0, 1, 1], [], []>} : vector<17x16xf32>, vector<16x128xf32>, vector<17x128xf32> -> vector<17x128xf32>
    %96 = arith.addf %93, %95 : vector<17x128xf32>
    %97 = vector.extract_strided_slice %96 {offsets = [16, 0], sizes = [1, 128], strides = [1, 1]} : vector<17x128xf32> to vector<1x128xf32>
    %cst_48 = arith.constant 0.000000e+00 : f32
    %98 = vector.broadcast %cst_48 : f32 to vector<1x128xf32>
    %99 = arith.subf %98, %97 : vector<1x128xf32>
    %100 = math.exp %99 : vector<1x128xf32>
    %cst_49 = arith.constant 1.000000e+00 : f32
    %101 = vector.broadcast %cst_49 : f32 to vector<1x128xf32>
    %102 = arith.addf %101, %100 : vector<1x128xf32>
    %cst_50 = arith.constant 1.000000e+00 : f32
    %103 = vector.broadcast %cst_50 : f32 to vector<1x128xf32>
    %104 = arith.divf %103, %102 : vector<1x128xf32>
    %105 = vector.extract_strided_slice %96 {offsets = [0, 0], sizes = [16, 128], strides = [1, 1]} : vector<17x128xf32> to vector<16x128xf32>
    %106 = vector.broadcast %104 : vector<1x128xf32> to vector<16x128xf32>
    %107 = arith.mulf %105, %106 : vector<16x128xf32>
    %c3_51 = arith.constant 3 : index
    %c0_52 = arith.constant 0 : index
    %c0_53 = arith.constant 0 : index
    %108 = vector.load %arg4[%c3_51, %c0_52, %c0_53] : memref<4x16x128xf32, #tpu.memory_space<vmem>>, vector<1x16x128xf32>
    %109 = vector.shape_cast %108 : vector<1x16x128xf32> to vector<16x128xf32>
    %110 = vector.shape_cast %107 : vector<16x128xf32> to vector<1x16x128xf32>
    tpu.vector_store %arg4[%c3_51, %c0_52, %c0_53], %110 {strides = array<i32>} : memref<4x16x128xf32, #tpu.memory_space<vmem>>, vector<1x16x128xf32>,
    return
  }
  func.func @transform_0(%arg0: i32) -> (i32, i32, i32) {
    %c0_i32 = arith.constant 0 : i32
    %c0_i32_0 = arith.constant 0 : i32
    %c0_i32_1 = arith.constant 0 : i32
    return %arg0, %c0_i32, %c0_i32_0 : i32, i32, i32
  }
  func.func @transform_1(%arg0: i32) -> (i32, i32, i32) {
    %c0_i32 = arith.constant 0 : i32
    %c0_i32_0 = arith.constant 0 : i32
    %c0_i32_1 = arith.constant 0 : i32
    %c0_i32_2 = arith.constant 0 : i32
    return %c0_i32, %c0_i32_0, %c0_i32_1 : i32, i32, i32
  }
  func.func @transform_2(%arg0: i32) -> (i32, i32) {
    %c0_i32 = arith.constant 0 : i32
    %c0_i32_0 = arith.constant 0 : i32
    %c0_i32_1 = arith.constant 0 : i32
    return %c0_i32, %c0_i32_0 : i32, i32
  }
  func.func @transform_3(%arg0: i32) -> (i32, i32, i32) {
    %c0_i32 = arith.constant 0 : i32
    %c0_i32_0 = arith.constant 0 : i32
    %c0_i32_1 = arith.constant 0 : i32
    return %arg0, %c0_i32, %c0_i32_0 : i32, i32, i32
  }
}

</mosaic_0001>

<bundles_post_ra>
// kernel: gated_conv1d_forward.1
= control target key start
LH: loop header
LB: loop body
LE: loop exit
PB: predicated region body
PF: predicated region fallthrough
CT: control target
= control target key end

     0   :  { %8 = vsyncpa [#allocation3], 0  ;;  %s2462_s0 = inlined_call_operand.vmem [shape: f32[8,16,130], index: 0, kind: input, shape index: {}]   ;;  %s2463_s1 = inlined_call_operand.vmem [shape: f32[3,17,16], index: 1, kind: input, shape index: {}]   ;;  %s2464_s2 = inlined_call_operand.vmem [shape: f32[17,1], index: 2, kind: input, shape index: {}]   ;;  %s2465_s3 = inlined_call_operand.hbm [shape: f32[8,16,128], index: 3, kind: output, shape index: {}]  }
   0x1   :  { %10 = vsyncpa [#allocation3 + $0x1], 0  ;;  %s1944_s12 = smov 0   ;;  %s1946_s13 = smov 0  }
   0x2   :  { %s1948_s14 = smov 0   ;;  %s1950_s15 = smov 0  }
   0x3 LB: > { %s1965_s16 = sadd.s32 4294967295, %s1914_s15   ;;  %s1497_s17 = sadd.s32 4294967294, %s1914_s15   ;;  %s1914_s15 = sphi %s1950_s15, %s2471_s15   ;;  %s1910_s14 = sphi %s1948_s14, %s2470_s14   ;;  %s1906_s13 = sphi %s1946_s13, %s2469_s13   ;;  %s1902_s12 = sphi %s1944_s12, %s2468_s12  }
   0x4   : > { %s1969_s18 = sadd.s32 1, %s1914_s15   ;;  %s91_s19 = sadd.s32 1, %s1910_s14 }
   0x5   : > { %s88_s20 = ssub.s32 %s1914_s15, %s1969_s18  ;;  %p101_p0 = scmp.ne.s32.totalorder %s1910_s14, %s1906_s13 }
   0x6   : > { %p89_p1 = scmp.eq.s32.totalorder %s88_s20, 0  ;;  %p102_p2 = scmp.eq.s32.totalorder %s1965_s16, 1 }
   0x7   : > { %p107_p3 = scmp.ne.s32.totalorder %s1906_s13, %s1902_s12  ;;  %p108_p4 = scmp.eq.s32.totalorder %s1497_s17, 1 }
   0x8   : > { %s1980_s21 = scalar_select %p89_p1, %s1910_s14, %s91_s19  }
   0x9   : > { %p1982_p5 = por %p102_p2, %p101_p0  ;;  %p1986_p6 = por %p108_p4, %p107_p3 }
   0xa   : > { %p1500_p7 = scmp.ge.s32.totalorder %s1914_s15, 1  ;;  %p142_p8 = scmp.lt.s32.totalorder %s1914_s15, 3 }
   0xc   : > { %p143_p9 = pnand %p1500_p7, %p142_p8 }
   0xd   : > { %s1502_s24 = sshll.u32 (!%p143_p9), %s1965_s16, 2  ;;  %s1918_s29 = smov (!%p143_p9), 127  }
   0xe   : > { %146 = sbr.rel (%p143_p9) target bundleno = 461 (0x1cd), region = 32  ;;  %p168_p10 = scmp.lt.s32.totalorder (!%p143_p9), %s1502_s24, 7 }
   0xf   : > { %s1919_s7 = smov (!%p143_p9), 126   ;;  %s164_s10 = sand.u32 (!%p143_p9), 1, %s1906_s13  }
  0x10   : > { %s1501_s11 = sshll.u32 (!%p143_p9), %s164_s10, 6  ;;  %s1573_s19 = sshll.u32 (!%p143_p9), %s1965_s16, 10 }
  0x11   : > { %s2377_s17 = scalar_lea.vmem (!%p143_p9), [#allocation2], %s1501_s11  ;;  %s2414_s26 = scalar_lea.hbm (!%p143_p9), %s2465_s3, %s1573_s19 }
  0x12   : > { %s1435_s20 = sshll.u32 (!%p143_p9), %s2377_s17, 4  ;;  %s2422_s16 = scalar_lea.sflag (!%p143_p9), [#allocation3], %s164_s10  ;;  %s2416_s20 = int_to_ptr.vmem [resolvable:$true] %s1435_s20 }
  0x13   : > { %v1916_v0 = vmov 0.0   ;;  %vm1917_vm0 = vmmov 0   ;;  %s2473_s24 = smov (!%p168_p10, %s1502_s24), 7  ;;  %v2014_v5 = vld [vmem:[%s2463_s1] sm:$0xff]  ;;  %vm193_vm1 = vcmask 130048   ;;  %v2026_v6 = vld [vmem:[%s2463_s1 + $0x8] sm:$0xff] }
  0x14   : > { %1634 = vmatprep.subr.mxu0 %v1916_v0  ;;  %1638 = vmatprep.mubr.msk.f32.mxu0 %vm1917_vm0, %v1916_v0  ;;  %s1571_s25 = sshll.u32 %s2473_s24, 5  ;;  %v2037_v7 = vld [vmem:[%s2463_s1 + $0x10] sm:$0x1]  ;;  %v1920_v20 = vmov 0   ;;  %v175_v21 = vld [vmem:[%s2464_s2] sm:$0xff]  ;;  %v176_v23 = vld [vmem:[%s2464_s2 + $0x8] sm:$0xff] }
  0x15   : > { %1647 = vmatprep.subr.mxu1 %v1916_v0  ;;  %1651 = vmatprep.mubr.msk.f32.mxu1 %vm1917_vm0, %v1916_v0  ;;  %s2002_s28 = scalar_lea.vmem %s2462_s0, %s1571_s25  ;;  %v177_v22 = vld [vmem:[%s2464_s2 + $0x10] sm:$0x1]  ;;  %vm313_vm2 = vcmask 1039360   ;;  %vm418_vm3 = vcmask 1031168   ;;  %v2118_v29 = vld [vmem:[%s2463_s1 + $0x18] sm:$0xff]  ;;  %v2131_v34 = vld [vmem:[%s2463_s1 + $0x20] sm:$0xff] }
  0x16   : > { %v191_v1 = vld [vmem:[%s2002_s28 + $0x10] sm:$0xff]  ;;  %v189_v2 = vld [vmem:[%s2002_s28] sm:$0xff]  ;;  %v192_v3 = vld [vmem:[%s2002_s28 + $0x18] sm:$0xff]  ;;  %1837 = vset.pattern.permute.xlu1 %v1920_v20  ;;  %1836 = vset.pattern.permute.xlu0 %v1920_v20  ;;  %s1854_s27 = scalar_lea.vmem %s2416_s20, 1024 }
  0x17   : > { %309 = vrot.lane.b32.xlu0 %v191_v1, %s1918_s29  ;;  %305 = vrot.lane.b32.xlu1 %v189_v2, %s1918_s29  ;;  %v190_v4 = vld [vmem:[%s2002_s28 + $0x8] sm:$0xff]  ;;  %v2042_v8 = vld [vmem:[%s2002_s28 + $0x30] sm:$0xff]  ;;  %p1855_p11 = scmp.ne.s32.totalorder %s2416_s20, %s1854_s27 }
  0x18   : > { %1635 = vmatpush3.msra.mxu0 %v191_v1  ;;  %v1523_v9 = vld [vmem:[%s2002_s28 + $0x38] sm:$0xff]  ;;  %v2053_v10 = vld [vmem:[%s2002_s28 + $0x20] sm:$0xff]  ;;  %v1521_v11 = vld [vmem:[%s2002_s28 + $0x28] sm:$0xff] }
  0x19   : > { %1636 = vmatprep.subr.mxu0 %v1916_v0  ;;  %v2066_v12 = vld [vmem:[%s2002_s28 + $0x50] sm:$0xff]  ;;  %v1538_v13 = vld [vmem:[%s2002_s28 + $0x58] sm:$0xff]  ;;  %v2073_v14 = vld [vmem:[%s2002_s28 + $0x40] sm:$0xff]  ;;  %p1856_p12 = pnand %p1855_p11, %p1982_p5 }
  0x1a   : > { %1637 = vmatpush3.msra.mxu0 %v189_v2  ;;  %v1536_v15 = vld [vmem:[%s2002_s28 + $0x48] sm:$0xff]  ;;  %v2086_v16 = vld [vmem:[%s2002_s28 + $0x70] sm:$0xff]  ;;  %v1553_v17 = vld [vmem:[%s2002_s28 + $0x78] sm:$0xff] }
  0x1b   : > { %311 = vrot.lane.b32.xlu0 %v192_v3, %s1918_s29  ;;  %307 = vrot.lane.b32.xlu1 %v190_v4, %s1918_s29  ;;  %v2093_v18 = vld [vmem:[%s2002_s28 + $0x60] sm:$0xff]  ;;  %v1551_v19 = vld [vmem:[%s2002_s28 + $0x68] sm:$0xff]  ;;  %p1857_p13 = pneg %p1856_p12  ;;  %s1921_s28 = smov [#allocation2]  }
  0x1c   : > { %1639 = vmatmul.mubr.msk.f32.vlgmr.msra.gmra.mxu0 %vm193_vm1, %v2014_v5  ;;  %1660 = vmatprep.subr.mxu0 %v1916_v0  ;;  %v2138_v37 = vld [vmem:[%s2463_s1 + $0x30] sm:$0xff]  ;;  %v2149_v39 = vld [vmem:[%s2463_s1 + $0x28] sm:$0x1]  ;;  %v2159_v42 = vld [vmem:[%s2463_s1 + $0x38] sm:$0xff] }
  0x1d   : > { %1641 = vmatprep.mubr.msk.f32.mxu0 %vm1917_vm0, %v1916_v0  ;;  %v2176_v46 = vld [vmem:[%s2463_s1 + $0x40] sm:$0x1] }
  0x1f   : > { %414 = vrot.lane.b32.xlu0 %v191_v1, %s1919_s7  ;;  %416 = vrot.lane.b32.xlu1 %v192_v3, %s1919_s7 }
  0x20   : > { %1642 = vmatmul.mubr.msk.f32.gmra.mxu0 %vm193_vm1, %v2026_v6 }
  0x21   : > { %1644 = vmatprep.mubr.msk.f32.mxu0 %vm1917_vm0, %v1916_v0 }
  0x23   : > { %410 = vrot.lane.b32.xlu0 %v189_v2, %s1919_s7  ;;  %412 = vrot.lane.b32.xlu1 %v190_v4, %s1919_s7 }
  0x24   : > { %1645 = vmatmul.mubr.msk.f32.gmra.mxu0 %vm193_vm1, %v2037_v7 }
  0x25   : > { %1664 = vmatprep.mubr.msk.f32.mxu0 %vm1917_vm0, %v1916_v0 }
  0x27   : > { %625 = vrot.lane.b32.xlu0 %v2042_v8, %s1918_s29  ;;  %627 = vrot.lane.b32.xlu1 %v1523_v9, %s1918_s29 }
  0x2b   : > { %621 = vrot.lane.b32.xlu0 %v2053_v10, %s1918_s29  ;;  %623 = vrot.lane.b32.xlu1 %v1521_v11, %s1918_s29 }
  0x2f   : > { %720 = vrot.lane.b32.xlu0 %v2042_v8, %s1919_s7  ;;  %722 = vrot.lane.b32.xlu1 %v1523_v9, %s1919_s7 }
  0x33   : > { %716 = vrot.lane.b32.xlu0 %v2053_v10, %s1919_s7  ;;  %718 = vrot.lane.b32.xlu1 %v1521_v11, %s1919_s7 }
  0x37   : > { %922 = vrot.lane.b32.xlu0 %v2066_v12, %s1918_s29  ;;  %924 = vrot.lane.b32.xlu1 %v1538_v13, %s1918_s29 }
  0x3b   : > { %918 = vrot.lane.b32.xlu0 %v2073_v14, %s1918_s29  ;;  %920 = vrot.lane.b32.xlu1 %v1536_v15, %s1918_s29 }
  0x3f   : > { %1017 = vrot.lane.b32.xlu0 %v2066_v12, %s1919_s7  ;;  %1019 = vrot.lane.b32.xlu1 %v1538_v13, %s1919_s7 }
  0x43   : > { %1013 = vrot.lane.b32.xlu0 %v2073_v14, %s1919_s7  ;;  %1015 = vrot.lane.b32.xlu1 %v1536_v15, %s1919_s7 }
  0x47   : > { %1219 = vrot.lane.b32.xlu0 %v2086_v16, %s1918_s29  ;;  %1221 = vrot.lane.b32.xlu1 %v1553_v17, %s1918_s29 }
  0x4b   : > { %1215 = vrot.lane.b32.xlu0 %v2093_v18, %s1918_s29  ;;  %1217 = vrot.lane.b32.xlu1 %v1551_v19, %s1918_s29  ;;  %s1858_s29 = sshll.u32 %s1921_s28, 4  ;;  %s1859_s29 = int_to_ptr.vmem [resolvable:$false] %s1858_s29 }
  0x4c   : > { %s1860_s30 = scalar_lea.vmem %s1859_s29, 2048  ;;  %p1861_p0 = scmp.lt.s32.totalorder %s2416_s20, %s1859_s29 }
  0x4d   : > { %p1862_p1 = scmp.lt.s32.totalorder %s1860_s30, %s1854_s27 }
  0x4f   : > { %1314 = vrot.lane.b32.xlu0 %v2086_v16, %s1919_s7  ;;  %1316 = vrot.lane.b32.xlu1 %v1553_v17, %s1919_s7  ;;  %p1863_p2 = por %p1862_p1, %p1861_p0 }
  0x51   : > { %p1864_p3 = pnand %p1863_p2, %p1857_p13 }
  0x53   : > { %1310 = vrot.lane.b32.xlu0 %v2093_v18, %s1919_s7  ;;  %1312 = vrot.lane.b32.xlu1 %v1551_v19, %s1919_s7 }
  0x57   : > { %285 = vperm.xlu1 %1837, %v175_v21   ;;  %295 = vperm.xlu0 %1836, %v177_v22  }
  0x5b   : > { %290 = vperm.xlu1 %1837, %v176_v23  }
  0x89   : > { %v310_v24 = vpop.permute.xlu0 %309  ;;  %v306_v25 = vpop.permute.xlu1 %305 }
  0x8d   : > { %v312_v26 = vpop.permute.xlu0 %311  ;;  %v308_v27 = vpop.permute.xlu1 %307 }
  0x8e   : > { %v315_v28 = vsel %vm313_vm2, %v310_v24, %v312_v26  ;;  %v314_v30 = vsel %vm313_vm2, %v306_v25, %v308_v27 }
  0x8f   : > { %1648 = vmatpush3.msra.mxu1 %v315_v28 }
  0x90   : > { %1649 = vmatprep.subr.mxu1 %v1916_v0 }
  0x91   : > { %v415_v31 = vpop.permute.xlu0 %414  ;;  %1650 = vmatpush3.msra.mxu1 %v314_v30  ;;  %v417_v32 = vpop.permute.xlu1 %416 }
  0x92   : > { %v420_v33 = vsel %vm418_vm3, %v415_v31, %v417_v32  ;;  %1652 = vmatmul.mubr.msk.f32.vlgmr.msra.gmra.mxu1 %vm193_vm1, %v2118_v29  ;;  %1673 = vmatprep.subr.mxu1 %v1916_v0 }
  0x93   : > { %1661 = vmatpush3.msra.mxu0 %v420_v33  ;;  %1654 = vmatprep.mubr.msk.f32.mxu1 %vm1917_vm0, %v1916_v0 }
  0x94   : > { %1662 = vmatprep.subr.mxu0 %v1916_v0  ;;  %1674 = vmatpush3.msra.mxu1 %v2042_v8 }
  0x95   : > { %v411_v35 = vpop.permute.xlu0 %410  ;;  %v413_v36 = vpop.permute.xlu1 %412  ;;  %1675 = vmatprep.subr.mxu1 %v1916_v0 }
  0x96   : > { %v419_v38 = vsel %vm418_vm3, %v411_v35, %v413_v36  ;;  %1655 = vmatmul.mubr.msk.f32.gmra.mxu1 %vm193_vm1, %v2131_v34 }
  0x97   : > { %1663 = vmatpush3.msra.mxu0 %v419_v38  ;;  %1657 = vmatprep.mubr.msk.f32.mxu1 %vm1917_vm0, %v1916_v0 }
  0x98   : > { %1665 = vmatmul.mubr.msk.f32.vlgmr.msra.gmra.mxu0 %vm193_vm1, %v2138_v37  ;;  %1686 = vmatprep.subr.mxu0 %v1916_v0 }
  0x99   : > { %v626_v40 = vpop.permute.xlu0 %625  ;;  %v628_v41 = vpop.permute.xlu1 %627  ;;  %1667 = vmatprep.mubr.msk.f32.mxu0 %vm1917_vm0, %v1916_v0  ;;  %1676 = vmatpush3.msra.mxu1 %v2053_v10 }
  0x9a   : > { %v630_v43 = vsel %vm313_vm2, %v626_v40, %v628_v41  ;;  %1658 = vmatmul.mubr.msk.f32.gmra.mxu1 %vm193_vm1, %v2149_v39  ;;  %1699 = vmatprep.subr.mxu1 %v1916_v0 }
  0x9b   : > { %1687 = vmatpush3.msra.mxu0 %v630_v43  ;;  %1677 = vmatprep.mubr.msk.f32.mxu1 %vm1917_vm0, %v1916_v0 }
  0x9c   : > { %1668 = vmatmul.mubr.msk.f32.gmra.mxu0 %vm193_vm1, %v2159_v42  ;;  %1688 = vmatprep.subr.mxu0 %v1916_v0 }
  0x9d   : > { %v622_v44 = vpop.permute.xlu0 %621  ;;  %v624_v45 = vpop.permute.xlu1 %623  ;;  %1670 = vmatprep.mubr.msk.f32.mxu0 %vm1917_vm0, %v1916_v0 }
  0x9e   : > { %v629_v47 = vsel %vm313_vm2, %v622_v44, %v624_v45  ;;  %1678 = vmatmul.mubr.msk.f32.vlgmr.msra.gmra.mxu1 %vm193_vm1, %v2014_v5 }
  0x9f   : > { %1689 = vmatpush3.msra.mxu0 %v629_v47  ;;  %1680 = vmatprep.mubr.msk.f32.mxu1 %vm1917_vm0, %v1916_v0 }
  0xa0   : > { %1671 = vmatmul.mubr.msk.f32.gmra.mxu0 %vm193_vm1, %v2176_v46  ;;  %1712 = vmatprep.subr.mxu0 %v1916_v0 }
  0xa1   : > { %v721_v48 = vpop.permute.xlu0 %720  ;;  %v723_v49 = vpop.permute.xlu1 %722  ;;  %1690 = vmatprep.mubr.msk.f32.mxu0 %vm1917_vm0, %v1916_v0 }
  0xa2   : > { %v725_v50 = vsel %vm418_vm3, %v721_v48, %v723_v49  ;;  %1681 = vmatmul.mubr.msk.f32.gmra.mxu1 %vm193_vm1, %v2026_v6 }
  0xa3   : > { %1700 = vmatpush3.msra.mxu1 %v725_v50  ;;  %1683 = vmatprep.mubr.msk.f32.mxu1 %vm1917_vm0, %v1916_v0 }
  0xa4   : > { %1691 = vmatmul.mubr.msk.f32.vlgmr.msra.gmra.mxu0 %vm193_vm1, %v2118_v29  ;;  %1701 = vmatprep.subr.mxu1 %v1916_v0 }
  0xa5   : > { %v717_v51 = vpop.permute.xlu0 %716  ;;  %v719_v52 = vpop.permute.xlu1 %718  ;;  %1693 = vmatprep.mubr.msk.f32.mxu0 %vm1917_vm0, %v1916_v0  ;;  %1713 = vmatpush3.msra.mxu0 %v2066_v12 }
  0xa6   : > { %1684 = vmatmul.mubr.msk.f32.gmra.mxu1 %vm193_vm1, %v2037_v7  ;;  %v724_v53 = vsel %vm418_vm3, %v717_v51, %v719_v52  ;;  %1714 = vmatprep.subr.mxu0 %v1916_v0 }
  0xa7   : > { %1702 = vmatpush3.msra.mxu1 %v724_v53  ;;  %1703 = vmatprep.mubr.msk.f32.mxu1 %vm1917_vm0, %v1916_v0 }
  0xa8   : > { %1694 = vmatmul.mubr.msk.f32.gmra.mxu0 %vm193_vm1, %v2131_v34  ;;  %1725 = vmatprep.subr.mxu1 %v1916_v0 }
  0xa9   : > { %1696 = vmatprep.mubr.msk.f32.mxu0 %vm1917_vm0, %v1916_v0  ;;  %v923_v54 = vpop.permute.xlu0 %922  ;;  %v925_v55 = vpop.permute.xlu1 %924  ;;  %1715 = vmatpush3.msra.mxu0 %v2073_v14 }
  0xaa   : > { %1704 = vmatmul.mubr.msk.f32.vlgmr.msra.gmra.mxu1 %vm193_vm1, %v2138_v37  ;;  %v927_v56 = vsel %vm313_vm2, %v923_v54, %v925_v55  ;;  %1738 = vmatprep.subr.mxu0 %v1916_v0 }
  0xab   : > { %1706 = vmatprep.mubr.msk.f32.mxu1 %vm1917_vm0, %v1916_v0  ;;  %1726 = vmatpush3.msra.mxu1 %v927_v56 }
  0xac   : > { %1697 = vmatmul.mubr.msk.f32.gmra.mxu0 %vm193_vm1, %v2149_v39  ;;  %1727 = vmatprep.subr.mxu1 %v1916_v0 }
  0xad   : > { %1716 = vmatprep.mubr.msk.f32.mxu0 %vm1917_vm0, %v1916_v0  ;;  %v919_v57 = vpop.permute.xlu0 %918  ;;  %v921_v58 = vpop.permute.xlu1 %920 }
  0xae   : > { %1707 = vmatmul.mubr.msk.f32.gmra.mxu1 %vm193_vm1, %v2159_v42  ;;  %v926_v59 = vsel %vm313_vm2, %v919_v57, %v921_v58 }
  0xaf   : > { %1709 = vmatprep.mubr.msk.f32.mxu1 %vm1917_vm0, %v1916_v0  ;;  %1728 = vmatpush3.msra.mxu1 %v926_v59 }
  0xb0   : > { %1717 = vmatmul.mubr.msk.f32.vlgmr.msra.gmra.mxu0 %vm193_vm1, %v2014_v5  ;;  %1751 = vmatprep.subr.mxu1 %v1916_v0 }
  0xb1   : > { %1719 = vmatprep.mubr.msk.f32.mxu0 %vm1917_vm0, %v1916_v0  ;;  %v1018_v60 = vpop.permute.xlu0 %1017  ;;  %v1020_v61 = vpop.permute.xlu1 %1019 }
  0xb2   : > { %1710 = vmatmul.mubr.msk.f32.gmra.mxu1 %vm193_vm1, %v2176_v46  ;;  %v1022_v62 = vsel %vm418_vm3, %v1018_v60, %v1020_v61 }
  0xb3   : > { %1729 = vmatprep.mubr.msk.f32.mxu1 %vm1917_vm0, %v1916_v0  ;;  %1739 = vmatpush3.msra.mxu0 %v1022_v62 }
  0xb4   : > { %1720 = vmatmul.mubr.msk.f32.gmra.mxu0 %vm193_vm1, %v2026_v6  ;;  %1740 = vmatprep.subr.mxu0 %v1916_v0 }
  0xb5   : > { %1722 = vmatprep.mubr.msk.f32.mxu0 %vm1917_vm0, %v1916_v0  ;;  %v1014_v63 = vpop.permute.xlu0 %1013  ;;  %v1016_v1 = vpop.permute.xlu1 %1015 }
  0xb6   : > { %1730 = vmatmul.mubr.msk.f32.vlgmr.msra.gmra.mxu1 %vm193_vm1, %v2118_v29  ;;  %v1021_v2 = vsel %vm418_vm3, %v1014_v63, %v1016_v1 }
  0xb7   : > { %1732 = vmatprep.mubr.msk.f32.mxu1 %vm1917_vm0, %v1916_v0  ;;  %1741 = vmatpush3.msra.mxu0 %v1021_v2 }
  0xb8   : > { %1723 = vmatmul.mubr.msk.f32.gmra.mxu0 %vm193_vm1, %v2037_v7  ;;  %1752 = vmatpush3.msra.mxu1 %v2086_v16 }
  0xb9   : > { %1742 = vmatprep.mubr.msk.f32.mxu0 %vm1917_vm0, %v1916_v0  ;;  %v1220_v3 = vpop.permute.xlu0 %1219  ;;  %v1222_v4 = vpop.permute.xlu1 %1221  ;;  %1764 = vmatprep.subr.mxu0 %v1916_v0 }
  0xba   : > { %1733 = vmatmul.mubr.msk.f32.gmra.mxu1 %vm193_vm1, %v2131_v34  ;;  %v1224_v8 = vsel %vm313_vm2, %v1220_v3, %v1222_v4  ;;  %1753 = vmatprep.subr.mxu1 %v1916_v0 }
  0xbb   : > { %1735 = vmatprep.mubr.msk.f32.mxu1 %vm1917_vm0, %v1916_v0  ;;  %1754 = vmatpush3.msra.mxu1 %v2093_v18 }
  0xbc   : > { %1743 = vmatmul.mubr.msk.f32.vlgmr.msra.gmra.mxu0 %vm193_vm1, %v2138_v37  ;;  %1777 = vmatprep.subr.mxu1 %v1916_v0 }
  0xbd   : > { %1745 = vmatprep.mubr.msk.f32.mxu0 %vm1917_vm0, %v1916_v0  ;;  %1765 = vmatpush3.msra.mxu0 %v1224_v8  ;;  %v1216_v9 = vpop.permute.xlu0 %1215  ;;  %v1218_v10 = vpop.permute.xlu1 %1217 }
  0xbe   : > { %1736 = vmatmul.mubr.msk.f32.gmra.mxu1 %vm193_vm1, %v2149_v39  ;;  %v1223_v11 = vsel %vm313_vm2, %v1216_v9, %v1218_v10  ;;  %1766 = vmatprep.subr.mxu0 %v1916_v0 }
  0xbf   : > { %1755 = vmatprep.mubr.msk.f32.mxu1 %vm1917_vm0, %v1916_v0  ;;  %1767 = vmatpush3.msra.mxu0 %v1223_v11  ;;  %v521_v11 = vlaneseq }
  0xc0   : > { %1746 = vmatmul.mubr.msk.f32.gmra.mxu0 %vm193_vm1, %v2159_v42 }
  0xc1   : > { %1748 = vmatprep.mubr.msk.f32.mxu0 %vm1917_vm0, %v1916_v0  ;;  %v1315_v12 = vpop.permute.xlu0 %1314  ;;  %v1317_v13 = vpop.permute.xlu1 %1316 }
  0xc2   : > { %1756 = vmatmul.mubr.msk.f32.vlgmr.msra.gmra.mxu1 %vm193_vm1, %v2014_v5  ;;  %v1319_v14 = vsel %vm418_vm3, %v1315_v12, %v1317_v13 }
  0xc3   : > { %1758 = vmatprep.mubr.msk.f32.mxu1 %vm1917_vm0, %v1916_v0  ;;  %1778 = vmatpush3.msra.mxu1 %v1319_v14 }
  0xc4   : > { %1749 = vmatmul.mubr.msk.f32.gmra.mxu0 %vm193_vm1, %v2176_v46  ;;  %1779 = vmatprep.subr.mxu1 %v1916_v0 }
  0xc5   : > { %1768 = vmatprep.mubr.msk.f32.mxu0 %vm1917_vm0, %v1916_v0  ;;  %v1311_v15 = vpop.permute.xlu0 %1310  ;;  %v1313_v16 = vpop.permute.xlu1 %1312 }
  0xc6   : > { %1759 = vmatmul.mubr.msk.f32.gmra.mxu1 %vm193_vm1, %v2026_v6  ;;  %v1318_v5 = vsel %vm418_vm3, %v1311_v15, %v1313_v16 }
  0xc7   : > { %1761 = vmatprep.mubr.msk.f32.mxu1 %vm1917_vm0, %v1916_v0  ;;  %1780 = vmatpush3.msra.mxu1 %v1318_v5  ;;  %v522_v5 = vshrl.u32 %v521_v11, 7 }
  0xc8   : > { %1769 = vmatmul.mubr.msk.f32.vlgmr.msra.gmra.mxu0 %vm193_vm1, %v2118_v29 }
  0xc9   : > { %1771 = vmatprep.mubr.msk.f32.mxu0 %vm1917_vm0, %v1916_v0 }
  0xca   : > { %1762 = vmatmul.mubr.msk.f32.gmra.mxu1 %vm193_vm1, %v2037_v7 }
  0xcb   : > { %1781 = vmatprep.mubr.msk.f32.mxu1 %vm1917_vm0, %v1916_v0 }
  0xcc   : > { %1772 = vmatmul.mubr.msk.f32.gmra.mxu0 %vm193_vm1, %v2131_v34 }
  0xcd   : > { %1774 = vmatprep.mubr.msk.f32.mxu0 %vm1917_vm0, %v1916_v0 }
  0xce   : > { %1782 = vmatmul.mubr.msk.f32.vlgmr.msra.gmra.mxu1 %vm193_vm1, %v2138_v37 }
  0xcf   : > { %1784 = vmatprep.mubr.msk.f32.mxu1 %vm1917_vm0, %v1916_v0 }
  0xd0   : > { %1775 = vmatmul.mubr.msk.f32.gmra.mxu0 %vm193_vm1, %v2149_v39 }
  0xd2   : > { %1785 = vmatmul.mubr.msk.f32.gmra.mxu1 %vm193_vm1, %v2159_v42  ;;  %v2322_v24 = vpop.permute.xlu0 %295  ;;  %v2346_v63 = vpop.permute.xlu1 %285 }
  0xd3   : > { %1787 = vmatprep.mubr.msk.f32.mxu1 %vm1917_vm0, %v1916_v0 }
  0xd6   : > { %1788 = vmatmul.mubr.msk.f32.gmra.mxu1 %vm193_vm1, %v2176_v46  ;;  %v2352_v14 = vpop.permute.xlu1 %290 }
  0xdc   : > { %v2314_v6 = vpop.f32.mrf.mxu0 }
  0xde   : > { %v1640_v7 = vpop.f32.mrf.mxu0 }
  0xe0   : > { %v2316_v17 = vpop.f32.mrf.mxu0 }
  0xe2   : > { %v1643_v18 = vpop.f32.mrf.mxu0 }
  0xe4   : > { %v279_v19 = vpop.f32.mrf.mxu0 }
  0xe5   : > { %v300_v28 = vadd.f32 %v2322_v24, %v279_v19  ;;  %v298_v19 = vadd.f32 %v2346_v63, %v2314_v6 }
  0xe6   : > { %v1646_v20 = vpop.f32.mrf.mxu0 }
  0xe7   : > { %v299_v20 = vadd.f32 %v2352_v14, %v2316_v17 }
 0x152   : > { %v2318_v21 = vpop.f32.mrf.mxu1 }
 0x154   : > { %v1653_v22 = vpop.f32.mrf.mxu1 }
 0x156   : > { %v2320_v23 = vpop.f32.mrf.mxu1 }
 0x158   : > { %v1656_v25 = vpop.f32.mrf.mxu1  ;;  %v2324_v0 = vpop.f32.mrf.mxu0 }
 0x15a   : > { %v403_v26 = vpop.f32.mrf.mxu1  ;;  %v1666_v27 = vpop.f32.mrf.mxu0 }
 0x15b   : > { %v409_v33 = vadd.f32 %v403_v26, %v300_v28  ;;  %v2364_v27 = vsub.s32 0, %v522_v5 }
 0x15c   : > { %v1659_v29 = vpop.f32.mrf.mxu1  ;;  %v2327_v30 = vpop.f32.mrf.mxu0 }
 0x15e   : > { %v1669_v31 = vpop.f32.mrf.mxu0  ;;  %v2329_v32 = vpop.f32.mrf.mxu1 }
 0x15f   : > { %v407_v31 = vadd.f32 %v2318_v21, %v298_v19 }
 0x160   : > { %v508_v34 = vpop.f32.mrf.mxu0  ;;  %v1679_v35 = vpop.f32.mrf.mxu1 }
 0x161   : > { %v514_v36 = vadd.f32 %v508_v34, %v409_v33  ;;  %v408_v33 = vadd.f32 %v2320_v23, %v299_v20 }
 0x162   : > { %v1672_v37 = vpop.f32.mrf.mxu0  ;;  %v2331_v38 = vpop.f32.mrf.mxu1 }
 0x163   : > { %v515_v39 = vsub.f32 0.0, %v514_v36  ;;  %v512_v36 = vadd.f32 %v2324_v0, %v407_v31  ;;  %v513_v37 = vadd.f32 %v2327_v30, %v408_v33 }
 0x164   : > { %v1682_v40 = vpop.f32.mrf.mxu1  ;;  %v2333_v41 = vpop.f32.mrf.mxu0 }
 0x165   : > { %v516_v42 = vmul.f32 1.442695, %v515_v39 }
 0x166   : > { %v610_v43 = vpop.f32.mrf.mxu1  ;;  %v1692_v44 = vpop.f32.mrf.mxu0 }
 0x167   : > { %1838 = vpow2.f32 %v516_v42  ;;  %v616_v53 = vadd.f32 %v610_v43, %v2322_v24 }
 0x168   : > { %v1685_v45 = vpop.f32.mrf.mxu1  ;;  %v2335_v46 = vpop.f32.mrf.mxu0 }
 0x16a   : > { %v1695_v47 = vpop.f32.mrf.mxu0  ;;  %v2337_v48 = vpop.f32.mrf.mxu1 }
 0x16c   : > { %v709_v49 = vpop.f32.mrf.mxu0  ;;  %v1705_v50 = vpop.f32.mrf.mxu1 }
 0x16d   : > { %v715_v56 = vadd.f32 %v709_v49, %v616_v53 }
 0x16e   : > { %v1698_v51 = vpop.f32.mrf.mxu0  ;;  %v2339_v52 = vpop.f32.mrf.mxu1 }
 0x170   : > { %v1708_v54 = vpop.f32.mrf.mxu1  ;;  %v2342_v55 = vpop.f32.mrf.mxu0 }
 0x172   : > { %v804_v57 = vpop.f32.mrf.mxu1  ;;  %v1718_v58 = vpop.f32.mrf.mxu0 }
 0x173   : > { %v810_v59 = vadd.f32 %v804_v57, %v715_v56 }
 0x174   : > { %v1839_v60 = vpop.eup %1838  ;;  %v1711_v61 = vpop.f32.mrf.mxu1 }
 0x175   : > { %v2344_v62 = vpop.f32.mrf.mxu0  ;;  %v518_v1 = vadd.f32 1.0, %v1839_v60  ;;  %v811_v2 = vsub.f32 0.0, %v810_v59 }
 0x176   : > { %v2348_v4 = vpop.f32.mrf.mxu1 }
 0x177   : > { %v1721_v3 = vpop.f32.mrf.mxu0  ;;  %1840 = vrcp.f32 %v518_v1  ;;  %v812_v8 = vmul.f32 1.442695, %v811_v2  ;;  %v614_v1 = vadd.f32 %v2329_v32, %v2346_v63  ;;  %v615_v2 = vadd.f32 %v2331_v38, %v2352_v14 }
 0x178   : > { %v1731_v10 = vpop.f32.mrf.mxu1 }
 0x179   : > { %v907_v9 = vpop.f32.mrf.mxu0  ;;  %1842 = vpow2.f32 %v812_v8  ;;  %v714_v10 = vadd.f32 %v2335_v46, %v615_v2  ;;  %v911_v46 = vadd.f32 %v2342_v55, %v2346_v63 }
 0x17a   : > { %v2350_v13 = vpop.f32.mrf.mxu1  ;;  %v913_v22 = vadd.f32 %v907_v9, %v2322_v24  ;;  %v713_v9 = vadd.f32 %v2333_v41, %v614_v1 }
 0x17b   : > { %v1724_v12 = vpop.f32.mrf.mxu0 }
 0x17c   : > { %v1734_v15 = vpop.f32.mrf.mxu1  ;;  %v808_v5 = vadd.f32 %v2337_v48, %v713_v9  ;;  %v912_v48 = vadd.f32 %v2344_v62, %v2352_v14 }
 0x17d   : > { %v2354_v16 = vpop.f32.mrf.mxu0 }
 0x17e   : > { %v1006_v7 = vpop.f32.mrf.mxu1 }
 0x17f   : > { %v1744_v18 = vpop.f32.mrf.mxu0  ;;  %v1012_v6 = vadd.f32 %v1006_v7, %v913_v22  ;;  %v809_v7 = vadd.f32 %v2339_v52, %v714_v10  ;;  %v1010_v52 = vadd.f32 %v2348_v4, %v911_v46 }
 0x180   : > { %v1737_v25 = vpop.f32.mrf.mxu1 }
 0x181   : > { %v2362_v26 = vpop.f32.mrf.mxu0  ;;  %v1105_v33 = vadd.f32 %v2354_v16, %v1010_v52 }
 0x182   : > { %v2366_v29 = vpop.f32.mrf.mxu1 }
 0x183   : > { %v1747_v28 = vpop.f32.mrf.mxu0  ;;  %v1208_v62 = vadd.f32 %v2366_v29, %v2346_v63 }
 0x184   : > { %v1841_v34 = vpop.eup %1840  ;;  %v1757_v35 = vpop.f32.mrf.mxu1  ;;  %v1011_v28 = vadd.f32 %v2350_v13, %v912_v48 }
 0x185   : > { %v1101_v17 = vpop.f32.mrf.mxu0  ;;  %v524_v39 = vrot.slane %v1841_v34, %v2364_v27 }
 0x186   : > { %v1107_v40 = vadd.f32 %v1101_v17, %v1012_v6  ;;  %v1843_v42 = vpop.eup %1842  ;;  %v2375_v43 = vpop.f32.mrf.mxu1  ;;  %v1106_v6 = vadd.f32 %v2362_v26, %v1011_v28 }
 0x187   : > { %v1750_v44 = vpop.f32.mrf.mxu0  ;;  %v525_v21 = vmul.f32 %v524_v39, %v512_v36  ;;  %v526_v45 = vmul.f32 %v524_v39, %v513_v37  ;;  %v814_v23 = vadd.f32 1.0, %v1843_v42  ;;  %v1209_v4 = vadd.f32 %v2375_v43, %v2352_v14 }
 0x188   : > { %v1108_v47 = vsub.f32 0.0, %v1107_v40  ;;  %v1760_v49 = vpop.f32.mrf.mxu1 }
 0x189   : > { %v1293_v50 = vpop.f32.mrf.mxu0  ;;  %527 = vst [vmem:[%s2377_s17] sm:$0xff] %v525_v21  ;;  %528 = vst [vmem:[%s2377_s17 + $0x8] sm:$0xff] %v526_v45  ;;  %1844 = vrcp.f32 %v814_v23 }
 0x18a   : > { %v1109_v0 = vmul.f32 1.442695, %v1108_v47  ;;  %v1204_v30 = vpop.f32.mrf.mxu1  ;;  %v1307_v13 = vadd.f32 %v1293_v50, %v1208_v62 }
 0x18b   : > { %v1770_v51 = vpop.f32.mrf.mxu0  ;;  %v1210_v3 = vadd.f32 %v1204_v30, %v2322_v24 }
 0x18c   : > { %1846 = vpow2.f32 %v1109_v0  ;;  %v1763_v53 = vpop.f32.mrf.mxu1 }
 0x18d   : > { %v1298_v54 = vpop.f32.mrf.mxu0 }
 0x18e   : > { %v1388_v56 = vpop.f32.mrf.mxu1  ;;  %v1308_v16 = vadd.f32 %v1298_v54, %v1209_v4 }
 0x18f   : > { %v1773_v57 = vpop.f32.mrf.mxu0  ;;  %v1402_v37 = vadd.f32 %v1388_v56, %v1307_v13 }
 0x190   : > { %v1783_v58 = vpop.f32.mrf.mxu1 }
 0x191   : > { %v1303_v59 = vpop.f32.mrf.mxu0 }
 0x192   : > { %v1393_v60 = vpop.f32.mrf.mxu1  ;;  %v1309_v11 = vadd.f32 %v1303_v59, %v1210_v3 }
 0x193   : > { %v1776_v61 = vpop.f32.mrf.mxu0  ;;  %v1403_v39 = vadd.f32 %v1393_v60, %v1308_v16 }
 0x194   : > { %v1786_v8 = vpop.f32.mrf.mxu1 }
 0x196   : > { %v1845_v12 = vpop.eup %1844  ;;  %v1398_v15 = vpop.f32.mrf.mxu1 }
 0x197   : > { %v820_v32 = vrot.slane %v1845_v12, %v2364_v27  ;;  %v1404_v18 = vadd.f32 %v1398_v15, %v1309_v11 }
 0x198   : > { %v1789_v19 = vpop.f32.mrf.mxu1 }
 0x199   : > { %v1847_v38 = vpop.eup %1846  ;;  %v821_v24 = vmul.f32 %v820_v32, %v808_v5  ;;  %v822_v20 = vmul.f32 %v820_v32, %v809_v7  ;;  %v1405_v25 = vsub.f32 0.0, %v1404_v18 }
 0x19a   : > { %v1111_v22 = vadd.f32 1.0, %v1847_v38 }
 0x19b   : > { %1533 = vst [vmem:[%s2377_s17 + $0x10] sm:$0xff] %v821_v24  ;;  %1534 = vst [vmem:[%s2377_s17 + $0x18] sm:$0xff] %v822_v20  ;;  %v1406_v41 = vmul.f32 1.442695, %v1405_v25 }
 0x19c   : > { %1848 = vrcp.f32 %v1111_v22 }
 0x19d   : > { %1850 = vpow2.f32 %v1406_v41 }
 0x1a9   : > { %v1849_v31 = vpop.eup %1848 }
 0x1aa   : > { %v1117_v34 = vrot.slane %v1849_v31, %v2364_v27  ;;  %v1851_v17 = vpop.eup %1850 }
 0x1ab   : > { %v1408_v55 = vadd.f32 1.0, %v1851_v17 }
 0x1ac   : > { %v1118_v35 = vmul.f32 %v1117_v34, %v1105_v33  ;;  %v1119_v36 = vmul.f32 %v1117_v34, %v1106_v6 }
 0x1ad   : > { %1852 = vrcp.f32 %v1408_v55 }
 0x1ae   : > { %1548 = vst [vmem:[%s2377_s17 + $0x20] sm:$0xff] %v1118_v35  ;;  %1549 = vst [vmem:[%s2377_s17 + $0x28] sm:$0xff] %v1119_v36 }
 0x1ba   : > { %v1853_v26 = vpop.eup %1852 }
 0x1bb   : > { %v1414_v40 = vrot.slane %v1853_v26, %v2364_v27 }
 0x1bd   : > { %v1415_v63 = vmul.f32 %v1414_v40, %v1402_v37  ;;  %v1416_v14 = vmul.f32 %v1414_v40, %v1403_v39 }
 0x1bf   : > { %1563 = vst [vmem:[%s2377_s17 + $0x30] sm:$0xff] %v1415_v63  ;;  %1564 = vst [vmem:[%s2377_s17 + $0x38] sm:$0xff] %v1416_v14 }
 0x1c0   : > { %1867 = shalt.err (!%p1864_p3)
}
 0x1c1   : > { %s1868_s4 = scalar_lea.hbm %s2414_s26, 1024  ;;  %s1872_s7 = scalar_lea.hbm %s2465_s3, 2048 }
 0x1c2   : > { %p1869_p4 = scmp.ne.s32.totalorder %s2414_s26, %s1868_s4  ;;  %p1873_p9 = scmp.lt.s32.totalorder %s2414_s26, %s2465_s3 }
 0x1c3   : > { %p1874_p10 = scmp.lt.s32.totalorder %s1872_s7, %s1868_s4 }
 0x1c4   : > { %p1870_p7 = pnand %p1869_p4, %p1982_p5 }
 0x1c5   : > { %p1875_p11 = por %p1874_p10, %p1873_p9 }
 0x1c6   : > { %p1871_p8 = pneg %p1870_p7 }
 0x1c8   : > { %p1876_p12 = pnand %p1875_p11, %p1871_p8 }
 0x1ca   : > { %1879 = shalt.err (!%p1876_p12)
}
 0x1cb   : > { %s1922_s10 = smov 128   ;;  %s1923_s11 = smov 8  }
 0x1cc   : > { %1790 = dma.vmem_to_hbm [thread:$0]  (%p1982_p5), %s2416_s20, 1024, %s2414_s26, %s2422_s16, %s1922_s10, %s1922_s10, %s1923_s11  }
 0x1cd PF: > { %p1796_p13 = scmp.ge.s32.totalorder %s1914_s15, 2  ;;  %s1450_s17 = sand.u32 1, %s1902_s12  }
 0x1ce   : > { %s1451_s19 = scalar_lea.sflag [#allocation3], %s1450_s17 }
 0x1cf   : > { %p1793_p0 = pnand %p1796_p13, %p1986_p6 }
 0x1d1   : > { %p1794_p1 = pneg %p1793_p0 }
 0x1d3   : > { %1897 = dma.done.wait (%p1794_p1), %s1451_s19, 1024  }
 0x1d4   : > { %1899 = vsyncadd (%p1794_p1), %s1451_s19, 4294966272  ;;  %p13_p2 = scmp.ge.s32.totalorder %s1969_s18, 4   ;;  %s2468_s12 = smov %s1906_s13 }
 0x1d5   : > { %s2469_s13 = smov %s1910_s14  ;;  %s2470_s14 = smov %s1980_s21 }
 0x1d6   : > { %s2471_s15 = smov %s1969_s18  ;;  %15 = sbr.rel (!%p13_p2) target bundleno = 3 (0x3), region = 75 }
 0x1db   :  { %1456 = vsyncpa [#allocation3], 1 }
 0x1dc   :  { %1458 = vsyncpa [#allocation3 + $0x1], 1 }

</bundles_post_ra>
